<compile_context>
chip_gen: v7x
topology: tpu7x:2x2x1
jax: 0.10.0
libtpu: 0.0.40
codegen_flags: <defaults>
</compile_context>

<pallas_src>
import functools

import jax
import jax.numpy as jnp
from jax.experimental import pallas as pl
from jax.experimental.pallas import tpu as pltpu


def _round_up(x, m):
    return ((x + m - 1) // m) * m


def _torsion_kernel(eps, s_ref, w1_ref, b1_ref, w2f_ref, wf_ref, bff_ref,
                    u_ref, norm_ref):
    # One tile of rows; all weights resident in VMEM (they are tiny).
    s0 = s_ref[...].astype(jnp.float32)                               # (T, c)

    h = jnp.dot(s0, w1_ref[...], preferred_element_type=jnp.float32) + b1_ref[...]
    h = jnp.maximum(h, 0.0)                                           # ReLU

    # Folded:  (h @ W2 + b2 + s0) @ Wf + bf  ==  h @ (W2@Wf) + s0 @ Wf + (b2@Wf + bf)
    u = (jnp.dot(h, w2f_ref[...], preferred_element_type=jnp.float32)
         + jnp.dot(s0, wf_ref[...], preferred_element_type=jnp.float32)
         + bff_ref[...])                                              # (T, 2*nt)

    sq = jnp.sum(u * u, axis=-1, keepdims=True)                       # (T, 1)
    # clamp(min=eps) then 1/sqrt on the EUP slot (no VPU divide).
    inv = jax.lax.rsqrt(jnp.maximum(sq, eps))

    u_ref[...] = u.astype(u_ref.dtype)
    norm_ref[...] = (u * inv).astype(norm_ref.dtype)


def torsion_angles(s, w1, b1, w2, b2, wf, bf, *, eps=1e-8, tile_rows=4096):
    """s: [..., c] float32.  Weights given as [in, out], biases as [out]."""
    c = s.shape[-1]
    out_dim = wf.shape[-1]
    lead = s.shape[:-1]
    s2 = s.reshape(-1, c)
    n = s2.shape[0]

    # Fold linear_2 into linear_final (wrapper-side, tiny matrices).
    w2f = w2 @ wf                               # (c, out_dim)
    bff = (b2 @ wf + bf).reshape(1, out_dim)    # (1, out_dim)
    b1r = b1.reshape(1, c)

    # Row tile: multiple of 128, large enough to amortize per-step overhead,
    # capped so (a) tiny inputs are not blown up beyond one block and (b) the
    # grid keeps >= 2 steps on large inputs (v7x megacore split).
    half = _round_up(pl.cdiv(n, 2), 128)
    tr = max(128, min(_round_up(tile_rows, 128), half))
    grid = (pl.cdiv(n, tr),)                    # ragged last block is clipped

    full = lambda i: (0, 0)

    u_out, norm_out = pl.pallas_call(
        functools.partial(_torsion_kernel, eps),
        out_shape=(jax.ShapeDtypeStruct((n, out_dim), s.dtype),
                   jax.ShapeDtypeStruct((n, out_dim), s.dtype)),
        grid_spec=pltpu.PrefetchScalarGridSpec(
            num_scalar_prefetch=0,
            grid=grid,
            in_specs=[
                pl.BlockSpec((tr, c), lambda i: (i, 0)),          # s rows
                pl.BlockSpec((c, c), full),                       # W1 (resident)
                pl.BlockSpec((1, c), full),                       # b1
                pl.BlockSpec((c, out_dim), full),                 # W2@Wf
                pl.BlockSpec((c, out_dim), full),                 # Wf
                pl.BlockSpec((1, out_dim), full),                 # b2@Wf + bf
            ],
            out_specs=[
                pl.BlockSpec((tr, out_dim), lambda i: (i, 0)),    # unnormalized
                pl.BlockSpec((tr, out_dim), lambda i: (i, 0)),    # normalized
            ],
        ),
        compiler_params=pltpu.CompilerParams(
            dimension_semantics=("parallel",),
            vmem_limit_bytes=48 * 1024 * 1024),
    )(s2, w1, b1r, w2f, wf, bff)

    un = u_out.reshape(*lead, out_dim)
    nm = norm_out.reshape(*lead, out_dim)
    return un, nm


def _reference(s, w1, b1, w2, b2, wf, bf, eps=1e-8):
    s0 = s
    h = jnp.maximum(s @ w1 + b1, 0.0)
    h = (h @ w2 + b2) + s0
    u = h @ wf + bf
    d = jnp.sqrt(jnp.maximum(jnp.sum(u * u, axis=-1, keepdims=True), eps))
    return u, u / d


if __name__ == "__main__":
    # Small, module-consistent shapes: batch=2, seq=8, c=32, num_torsions=7.
    B, S, C, NT = 2, 8, 32, 7
    OUT = NT * 2

    key = jax.random.PRNGKey(0)
    ks = jax.random.split(key, 7)

    s = jax.random.normal(ks[0], (B, S, C), dtype=jnp.float32)

    # Deterministic synthetic parameters (module __init__ defines shapes:
    # linear_1/2: [C, C], linear_final: [C, 2*NT]).  True 'final' init would
    # be all-zeros; we use small random values so the normalization path is
    # exercised non-trivially.
    w1 = jax.random.normal(ks[1], (C, C), dtype=jnp.float32) * (2.0 / C) ** 0.5
    b1 = jnp.zeros((C,), dtype=jnp.float32)
    w2 = jax.random.normal(ks[2], (C, C), dtype=jnp.float32) * (2.0 / C) ** 0.5
    b2 = jnp.zeros((C,), dtype=jnp.float32)
    wf = jax.random.normal(ks[3], (C, OUT), dtype=jnp.float32) * 0.02
    bf = jnp.zeros((OUT,), dtype=jnp.float32)
    # TODO(synk): linear_3 exists in __init__ but is unused in forward(); omitted.

    un, nm = torsion_angles(s, w1, b1, w2, b2, wf, bf)
    jax.block_until_ready((un, nm))

    un_ref, nm_ref = _reference(s, w1, b1, w2, b2, wf, bf)
    assert un.shape == (B, S, OUT) and nm.shape == (B, S, OUT)
    # The W2@Wf folding reassociates the float math -> slightly looser tol.
    assert jnp.allclose(un, un_ref, atol=1e-4, rtol=1e-4)
    assert jnp.allclose(nm, nm_ref, atol=1e-4, rtol=1e-4)

    print("KERNEL_OK")
</pallas_src>

<mosaic_0001>
module attributes {stable_mosaic.version = 11 : i64} {
  func.func @_torsion_kernel(%arg0: i32, %arg1: memref<128x32xf32, #tpu.memory_space<vmem>>, %arg2: memref<32x32xf32, #tpu.memory_space<vmem>>, %arg3: memref<1x32xf32, #tpu.memory_space<vmem>>, %arg4: memref<32x14xf32, #tpu.memory_space<vmem>>, %arg5: memref<32x14xf32, #tpu.memory_space<vmem>>, %arg6: memref<1x14xf32, #tpu.memory_space<vmem>>, %arg7: memref<128x14xf32, #tpu.memory_space<vmem>>, %arg8: memref<128x14xf32, #tpu.memory_space<vmem>>) attributes {dimension_semantics = [#tpu.dimension_semantics<parallel>], iteration_bounds = array<i64: 1>, scalar_prefetch = 0 : i64, scratch_operands = 0 : i64, tpu.core_type = #tpu.core_type<tc>, window_params = [{transform_indices = @transform_0, window_bounds = array<i64: 128, 32>}, {pipeline_mode = #tpu.pipeline_mode<synchronous>, transform_indices = @transform_1, window_bounds = array<i64: 32, 32>}, {pipeline_mode = #tpu.pipeline_mode<synchronous>, transform_indices = @transform_2, window_bounds = array<i64: 1, 32>}, {pipeline_mode = #tpu.pipeline_mode<synchronous>, transform_indices = @transform_3, window_bounds = array<i64: 32, 14>}, {pipeline_mode = #tpu.pipeline_mode<synchronous>, transform_indices = @transform_4, window_bounds = array<i64: 32, 14>}, {pipeline_mode = #tpu.pipeline_mode<synchronous>, transform_indices = @transform_5, window_bounds = array<i64: 1, 14>}, {transform_indices = @transform_6, window_bounds = array<i64: 128, 14>}, {transform_indices = @transform_7, window_bounds = array<i64: 128, 14>}]} {
    %c0 = arith.constant 0 : index
    %c0_0 = arith.constant 0 : index
    %0 = vector.load %arg1[%c0, %c0_0] : memref<128x32xf32, #tpu.memory_space<vmem>>, vector<128x32xf32>
    %c0_1 = arith.constant 0 : index
    %c0_2 = arith.constant 0 : index
    %1 = vector.load %arg2[%c0_1, %c0_2] : memref<32x32xf32, #tpu.memory_space<vmem>>, vector<32x32xf32>
    %cst = arith.constant dense<0.000000e+00> : vector<128x32xf32>
    %2 = tpu.matmul %0, %1, %cst {dimension_numbers = #tpu.dot_dimension_numbers<[1], [0], [0], [1], [0, 0, 1, 1], [], []>} : vector<128x32xf32>, vector<32x32xf32>, vector<128x32xf32> -> vector<128x32xf32>
    %c0_3 = arith.constant 0 : index
    %c0_4 = arith.constant 0 : index
    %3 = vector.load %arg3[%c0_3, %c0_4] : memref<1x32xf32, #tpu.memory_space<vmem>>, vector<1x32xf32>
    %4 = vector.broadcast %3 : vector<1x32xf32> to vector<128x32xf32>
    %5 = arith.addf %2, %4 : vector<128x32xf32>
    %cst_5 = arith.constant 0.000000e+00 : f32
    %6 = vector.broadcast %cst_5 : f32 to vector<128x32xf32>
    %7 = arith.maximumf %5, %6 : vector<128x32xf32>
    %c0_6 = arith.constant 0 : index
    %c0_7 = arith.constant 0 : index
    %8 = vector.load %arg4[%c0_6, %c0_7] : memref<32x14xf32, #tpu.memory_space<vmem>>, vector<32x14xf32>
    %cst_8 = arith.constant dense<0.000000e+00> : vector<128x14xf32>
    %9 = tpu.matmul %7, %8, %cst_8 {dimension_numbers = #tpu.dot_dimension_numbers<[1], [0], [0], [1], [0, 0, 1, 1], [], []>} : vector<128x32xf32>, vector<32x14xf32>, vector<128x14xf32> -> vector<128x14xf32>
    %c0_9 = arith.constant 0 : index
    %c0_10 = arith.constant 0 : index
    %10 = vector.load %arg5[%c0_9, %c0_10] : memref<32x14xf32, #tpu.memory_space<vmem>>, vector<32x14xf32>
    %cst_11 = arith.constant dense<0.000000e+00> : vector<128x14xf32>
    %11 = tpu.matmul %0, %10, %cst_11 {dimension_numbers = #tpu.dot_dimension_numbers<[1], [0], [0], [1], [0, 0, 1, 1], [], []>} : vector<128x32xf32>, vector<32x14xf32>, vector<128x14xf32> -> vector<128x14xf32>
    %12 = arith.addf %9, %11 : vector<128x14xf32>
    %c0_12 = arith.constant 0 : index
    %c0_13 = arith.constant 0 : index
    %13 = vector.load %arg6[%c0_12, %c0_13] : memref<1x14xf32, #tpu.memory_space<vmem>>, vector<1x14xf32>
    %14 = vector.broadcast %13 : vector<1x14xf32> to vector<128x14xf32>
    %15 = arith.addf %12, %14 : vector<128x14xf32>
    %16 = arith.mulf %15, %15 : vector<128x14xf32>
    %cst_14 = arith.constant dense<0.000000e+00> : vector<128xf32>
    %17 = vector.multi_reduction <add>, %16, %cst_14 [1] : vector<128x14xf32> to vector<128xf32>
    %18 = vector.shape_cast %17 : vector<128xf32> to vector<128x1xf32>
    %cst_15 = arith.constant 9.99999993E-9 : f32
    %19 = vector.broadcast %cst_15 : f32 to vector<128x1xf32>
    %20 = arith.maximumf %18, %19 : vector<128x1xf32>
    %21 = math.rsqrt %20 : vector<128x1xf32>
    %c0_16 = arith.constant 0 : index
    %c0_17 = arith.constant 0 : index
    %22 = vector.load %arg7[%c0_16, %c0_17] : memref<128x14xf32, #tpu.memory_space<vmem>>, vector<128x14xf32>
    tpu.vector_store %arg7[%c0_16, %c0_17], %15 {strides = array<i32>} : memref<128x14xf32, #tpu.memory_space<vmem>>, vector<128x14xf32>,
    %23 = vector.broadcast %21 : vector<128x1xf32> to vector<128x14xf32>
    %24 = arith.mulf %15, %23 : vector<128x14xf32>
    %c0_18 = arith.constant 0 : index
    %c0_19 = arith.constant 0 : index
    %25 = vector.load %arg8[%c0_18, %c0_19] : memref<128x14xf32, #tpu.memory_space<vmem>>, vector<128x14xf32>
    tpu.vector_store %arg8[%c0_18, %c0_19], %24 {strides = array<i32>} : memref<128x14xf32, #tpu.memory_space<vmem>>, vector<128x14xf32>,
    return
  }
  func.func @transform_0(%arg0: i32) -> (i32, i32) {
    %c0_i32 = arith.constant 0 : i32
    %c0_i32_0 = arith.constant 0 : i32
    return %arg0, %c0_i32 : i32, i32
  }
  func.func @transform_1(%arg0: i32) -> (i32, i32) {
    %c0_i32 = arith.constant 0 : i32
    %c0_i32_0 = arith.constant 0 : i32
    %c0_i32_1 = arith.constant 0 : i32
    return %c0_i32, %c0_i32_0 : i32, i32
  }
  func.func @transform_2(%arg0: i32) -> (i32, i32) {
    %c0_i32 = arith.constant 0 : i32
    %c0_i32_0 = arith.constant 0 : i32
    %c0_i32_1 = arith.constant 0 : i32
    return %c0_i32, %c0_i32_0 : i32, i32
  }
  func.func @transform_3(%arg0: i32) -> (i32, i32) {
    %c0_i32 = arith.constant 0 : i32
    %c0_i32_0 = arith.constant 0 : i32
    %c0_i32_1 = arith.constant 0 : i32
    return %c0_i32, %c0_i32_0 : i32, i32
  }
  func.func @transform_4(%arg0: i32) -> (i32, i32) {
    %c0_i32 = arith.constant 0 : i32
    %c0_i32_0 = arith.constant 0 : i32
    %c0_i32_1 = arith.constant 0 : i32
    return %c0_i32, %c0_i32_0 : i32, i32
  }
  func.func @transform_5(%arg0: i32) -> (i32, i32) {
    %c0_i32 = arith.constant 0 : i32
    %c0_i32_0 = arith.constant 0 : i32
    %c0_i32_1 = arith.constant 0 : i32
    return %c0_i32, %c0_i32_0 : i32, i32
  }
  func.func @transform_6(%arg0: i32) -> (i32, i32) {
    %c0_i32 = arith.constant 0 : i32
    %c0_i32_0 = arith.constant 0 : i32
    return %arg0, %c0_i32 : i32, i32
  }
  func.func @transform_7(%arg0: i32) -> (i32, i32) {
    %c0_i32 = arith.constant 0 : i32
    %c0_i32_0 = arith.constant 0 : i32
    return %arg0, %c0_i32 : i32, i32
  }
}

</mosaic_0001>

<bundles_post_ra>
// kernel: tpu_custom_call.1
= control target key start
LH: loop header
LB: loop body
LE: loop exit
PB: predicated region body
PF: predicated region fallthrough
CT: control target
= control target key end

     0   :  { %13 = vsyncpa [#allocation3], 0  ;;  %s1516_s0 = inlined_call_operand.vmem [shape: f32[16,32], index: 0, kind: input, shape index: {}]   ;;  %s1517_s1 = inlined_call_operand.vmem [shape: f32[32,32], index: 1, kind: input, shape index: {}]   ;;  %s1518_s2 = inlined_call_operand.vmem [shape: f32[1,32], index: 2, kind: input, shape index: {}]   ;;  %s1519_s3 = inlined_call_operand.vmem [shape: f32[32,14], index: 3, kind: input, shape index: {}]   ;;  %s1520_s4 = inlined_call_operand.vmem [shape: f32[32,14], index: 4, kind: input, shape index: {}]   ;;  %s1521_s5 = inlined_call_operand.vmem [shape: f32[1,14], index: 5, kind: input, shape index: {}]   ;;  %s1522_s6 = inlined_call_operand.hbm [shape: f32[16,14], index: 6, kind: output, shape index: {0}]   ;;  %s1523_s7 = inlined_call_operand.hbm [shape: f32[16,14], index: 7, kind: output, shape index: {1}]  }
   0x1   :  { %14 = vsyncpa [#allocation5], 0  ;;  %v43_v0 = vld [vmem:[%s1517_s1] sm:$0xff]  ;;  %v44_v1 = vld [vmem:[%s1517_s1 + $0x8] sm:$0xff]  ;;  %vm54_vm0 = vcmask 261120   ;;  %vm649_vm1 = vcmask 113664  }
   0x2   :  { %v1016_v2 = vpack.c.bf16 %v44_v1, %v43_v0  ;;  %v45_v3 = vld [vmem:[%s1517_s1 + $0x10] sm:$0xff]  ;;  %v46_v4 = vld [vmem:[%s1517_s1 + $0x18] sm:$0xff]  ;;  %v1203_v5 = vld [vmem:[%s1516_s0] sm:$0xff] }
   0x3   :  { %v1020_v6 = vpack.c.bf16 %v46_v4, %v45_v3  ;;  %928 = vmatprep.mubr.msk.f32.mxu0 %vm54_vm0, %v1203_v5  ;;  %v35_v7 = vld [vmem:[%s1516_s0 + $0x40] sm:$0xff]  ;;  %v269_v9 = vld [vmem:[%s1520_s4 + $0x8] sm:$0xff]  ;;  %v270_v10 = vld [vmem:[%s1520_s4 + $0x10] sm:$0xff] }
   0x4   :  { %1017 = vmatprep.subr.bf16.mxu0 %v1016_v2  ;;  %972 = vmatprep.mubr.msk.f32.mxu1 %vm54_vm0, %v35_v7  ;;  %v268_v8 = vld [vmem:[%s1520_s4] sm:$0xff]  ;;  %v28_v11 = vld [vmem:[%s1516_s0 + $0x8] sm:$0xff]  ;;  %v271_v13 = vld [vmem:[%s1520_s4 + $0x18] sm:$0xff] }
   0x5   :  { %1019 = vmatpush3.bf16.msra.mxu0 %v1016_v2  ;;  %v1024_v12 = vpack.c.bf16 %v269_v9, %v268_v8  ;;  %v29_v14 = vld [vmem:[%s1516_s0 + $0x10] sm:$0xff]  ;;  %v1028_v15 = vpack.c.bf16 %v271_v13, %v270_v10  ;;  %v264_v16 = vld [vmem:[%s1519_s3] sm:$0xff]  ;;  %v265_v17 = vld [vmem:[%s1519_s3 + $0x8] sm:$0xff] }
   0x6   :  { %1021 = vmatprep.subr.bf16.mxu0 %v1020_v6  ;;  %v30_v18 = vld [vmem:[%s1516_s0 + $0x18] sm:$0xff]  ;;  %v1032_v19 = vpack.c.bf16 %v265_v17, %v264_v16  ;;  %v31_v20 = vld [vmem:[%s1516_s0 + $0x20] sm:$0xff]  ;;  %v266_v21 = vld [vmem:[%s1519_s3 + $0x10] sm:$0xff] }
   0x7   :  { %1040 = vmatprep.subr.bf16.mxu1 %v1024_v12  ;;  %v267_v22 = vld [vmem:[%s1519_s3 + $0x18] sm:$0xff]  ;;  %v32_v23 = vld [vmem:[%s1516_s0 + $0x28] sm:$0xff]  ;;  %v33_v24 = vld [vmem:[%s1516_s0 + $0x30] sm:$0xff] }
   0x8   :  { %1042 = vmatpush3.bf16.msra.mxu1 %v1024_v12  ;;  %v36_v25 = vld [vmem:[%s1516_s0 + $0x48] sm:$0xff]  ;;  %v1036_v26 = vpack.c.bf16 %v267_v22, %v266_v21  ;;  %v37_v27 = vld [vmem:[%s1516_s0 + $0x50] sm:$0xff]  ;;  %v34_v28 = vld [vmem:[%s1516_s0 + $0x38] sm:$0xff] }
   0x9   :  { %1023 = vmatpush3.bf16.msra.mxu0 %v1020_v6  ;;  %1041 = vmatprep.subr.bf16.mxu1 %v1028_v15  ;;  %v38_v29 = vld [vmem:[%s1516_s0 + $0x58] sm:$0xff]  ;;  %v39_v30 = vld [vmem:[%s1516_s0 + $0x60] sm:$0xff]  ;;  %v40_v31 = vld [vmem:[%s1516_s0 + $0x68] sm:$0xff] }
   0xa   :  { %1025 = vmatprep.subr.bf16.mxu0 %v1024_v12  ;;  %v41_v32 = vld [vmem:[%s1516_s0 + $0x70] sm:$0xff]  ;;  %v42_v33 = vld [vmem:[%s1516_s0 + $0x78] sm:$0xff]  ;;  %v810_v34 = vld [vmem:[%s1518_s2] ss:$0 sm:$0xff] }
   0xc   :  { %929 = vmatmul.mubr.msk.f32.vlgmr.msra.gmra.mrb[0].mxu0 %vm54_vm0, %v28_v11  ;;  %1043 = vmatpush3.bf16.msra.mxu1 %v1028_v15 }
   0xd   :  { %931 = vmatprep.mubr.msk.f32.mxu0 %vm54_vm0, %v29_v14  ;;  %1027 = vmatpush3.bf16.msra.mxu0 %v1024_v12 }
   0xe   :  { %1029 = vmatprep.subr.bf16.mxu0 %v1028_v15  ;;  %1033 = vmatprep.subr.bf16.mxu1 %v1032_v19 }
   0xf   :  { %973 = vmatmul.mubr.msk.f32.vlgmr.msra.gmra.mrb[0].mxu1 %vm54_vm0, %v36_v25 }
  0x10   :  { %932 = vmatmul.mubr.msk.f32.gmra.mrb[2].mxu0 %vm54_vm0, %v30_v18  ;;  %1035 = vmatpush3.bf16.msra.mxu1 %v1032_v19 }
  0x11   :  { %934 = vmatprep.mubr.msk.f32.mxu0 %vm54_vm0, %v31_v20  ;;  %1031 = vmatpush3.bf16.msra.mxu0 %v1028_v15 }
  0x12   :  { %975 = vmatprep.mubr.msk.f32.mxu1 %vm54_vm0, %v37_v27  ;;  %1037 = vmatprep.subr.bf16.mxu1 %v1036_v26 }
  0x13   :  { %976 = vmatmul.mubr.msk.f32.gmra.mrb[2].mxu1 %vm54_vm0, %v38_v29 }
  0x14   :  { %935 = vmatmul.mubr.msk.f32.gmra.mrb[4].mxu0 %vm54_vm0, %v32_v23  ;;  %978 = vmatprep.mubr.msk.f32.mxu1 %vm54_vm0, %v39_v30 }
  0x15   :  { %937 = vmatprep.mubr.msk.f32.mxu0 %vm54_vm0, %v33_v24  ;;  %1039 = vmatpush3.bf16.msra.mxu1 %v1036_v26 }
  0x17   :  { %979 = vmatmul.mubr.msk.f32.gmra.mrb[4].mxu1 %vm54_vm0, %v40_v31 }
  0x18   :  { %938 = vmatmul.mubr.msk.f32.gmra.mrb[6].mxu0 %vm54_vm0, %v34_v28  ;;  %981 = vmatprep.mubr.msk.f32.mxu1 %vm54_vm0, %v41_v32 }
  0x19   :  { %940 = vmatprep.mubr.msk.f32.mxu0 %vm54_vm0, %v35_v7 }
  0x1b   :  { %982 = vmatmul.mubr.msk.f32.gmra.mrb[6].mxu1 %vm54_vm0, %v42_v33 }
  0x1c   :  { %941 = vmatmul.mubr.msk.f32.gmra.mrb[8].mxu0 %vm54_vm0, %v36_v25 }
  0x1d   :  { %943 = vmatprep.mubr.msk.f32.mxu0 %vm54_vm0, %v37_v27 }
  0x20   :  { %944 = vmatmul.mubr.msk.f32.gmra.mrb[10].mxu0 %vm54_vm0, %v38_v29 }
  0x21   :  { %946 = vmatprep.mubr.msk.f32.mxu0 %vm54_vm0, %v39_v30 }
  0x24   :  { %947 = vmatmul.mubr.msk.f32.gmra.mrb[12].mxu0 %vm54_vm0, %v40_v31 }
  0x25   :  { %949 = vmatprep.mubr.msk.f32.mxu0 %vm54_vm0, %v41_v32 }
  0x28   :  { %950 = vmatmul.mubr.msk.f32.gmra.mrb[14].mxu0 %vm54_vm0, %v42_v33 }
  0x29   :  { %960 = vmatprep.mubr.msk.f32.mxu0 %vm54_vm0, %v1203_v5 }
  0x2c   :  { %961 = vmatmul.mubr.msk.f32.vlgmr.msra.gmra.mrb[16].mxu0 %vm54_vm0, %v28_v11 }
  0x2d   :  { %963 = vmatprep.mubr.msk.f32.mxu0 %vm54_vm0, %v29_v14 }
  0x30   :  { %964 = vmatmul.mubr.msk.f32.gmra.mrb[18].mxu0 %vm54_vm0, %v30_v18 }
  0x31   :  { %966 = vmatprep.mubr.msk.f32.mxu0 %vm54_vm0, %v31_v20 }
  0x34   :  { %967 = vmatmul.mubr.msk.f32.gmra.mrb[20].mxu0 %vm54_vm0, %v32_v23 }
  0x35   :  { %969 = vmatprep.mubr.msk.f32.mxu0 %vm54_vm0, %v33_v24 }
  0x38   :  { %970 = vmatmul.mubr.msk.f32.gmra.mrb[22].mxu0 %vm54_vm0, %v34_v28  ;;  %v1330_v28 = vld [vmem:[%s1521_s5] ss:$0 sm:$0xff] }
  0xdf   :  { %v930_v35 = vpop.f32.mrb[0].mxu0 }
  0xe0   :  { %v175_v36 = vadd.f32 %v930_v35, %v810_v34  ;;  %v169_v37 = vpop.f32.mrb[1].mxu0 }
  0xe1   :  { %v170_v38 = vadd.f32 %v810_v34, %v169_v37 }
  0xe2   :  { %v249_v41 = vmax.f32 %v175_v36, 0.0 }
  0xe3   :  { %v248_v39 = vmax.f32 %v170_v38, 0.0  ;;  %v933_v40 = vpop.f32.mrb[2].mxu0 }
  0xe4   :  { %v185_v42 = vadd.f32 %v933_v40, %v810_v34  ;;  %v179_v43 = vpop.f32.mrb[3].mxu0 }
  0xe5   :  { %v180_v44 = vadd.f32 %v810_v34, %v179_v43  ;;  %992 = vmatprep.mubr.msk.f32.mxu1 %vm54_vm0, %v248_v39 }
  0xe6   :  { %993 = vmatmul.mubr.msk.f32.vlgmr.msra.gmra.mrb[8].mxu1 %vm54_vm0, %v249_v41  ;;  %v251_v47 = vmax.f32 %v185_v42, 0.0 }
  0xe7   :  { %v250_v45 = vmax.f32 %v180_v44, 0.0  ;;  %v936_v46 = vpop.f32.mrb[4].mxu0 }
  0xe8   :  { %v195_v48 = vadd.f32 %v936_v46, %v810_v34  ;;  %v189_v49 = vpop.f32.mrb[5].mxu0 }
  0xe9   :  { %v190_v50 = vadd.f32 %v810_v34, %v189_v49  ;;  %995 = vmatprep.mubr.msk.f32.mxu1 %vm54_vm0, %v250_v45 }
  0xea   :  { %v253_v51 = vmax.f32 %v195_v48, 0.0  ;;  %996 = vmatmul.mubr.msk.f32.gmra.mrb[10].mxu1 %vm54_vm0, %v251_v47 }
  0xeb   :  { %v252_v52 = vmax.f32 %v190_v50, 0.0  ;;  %v939_v53 = vpop.f32.mrb[6].mxu0 }
  0xec   :  { %v205_v54 = vadd.f32 %v939_v53, %v810_v34  ;;  %v199_v55 = vpop.f32.mrb[7].mxu0 }
  0xed   :  { %v200_v56 = vadd.f32 %v810_v34, %v199_v55  ;;  %998 = vmatprep.mubr.msk.f32.mxu1 %vm54_vm0, %v252_v52 }
  0xee   :  { %v255_v57 = vmax.f32 %v205_v54, 0.0  ;;  %999 = vmatmul.mubr.msk.f32.gmra.mrb[12].mxu1 %vm54_vm0, %v253_v51 }
  0xef   :  { %v254_v58 = vmax.f32 %v200_v56, 0.0  ;;  %v942_v59 = vpop.f32.mrb[8].mxu0 }
  0xf0   :  { %v215_v60 = vadd.f32 %v942_v59, %v810_v34  ;;  %v209_v61 = vpop.f32.mrb[9].mxu0 }
  0xf1   :  { %v210_v62 = vadd.f32 %v810_v34, %v209_v61  ;;  %1001 = vmatprep.mubr.msk.f32.mxu1 %vm54_vm0, %v254_v58 }
  0xf2   :  { %v257_v63 = vmax.f32 %v215_v60, 0.0  ;;  %1002 = vmatmul.mubr.msk.f32.gmra.mrb[14].mxu1 %vm54_vm0, %v255_v57 }
  0xf3   :  { %v256_v0 = vmax.f32 %v210_v62, 0.0  ;;  %v945_v1 = vpop.f32.mrb[10].mxu0 }
  0xf4   :  { %v225_v2 = vadd.f32 %v945_v1, %v810_v34  ;;  %v219_v3 = vpop.f32.mrb[11].mxu0 }
  0xf5   :  { %v220_v4 = vadd.f32 %v810_v34, %v219_v3  ;;  %1004 = vmatprep.mubr.msk.f32.mxu1 %vm54_vm0, %v256_v0 }
  0xf6   :  { %v259_v5 = vmax.f32 %v225_v2, 0.0  ;;  %1005 = vmatmul.mubr.msk.f32.gmra.mrb[0].mxu1 %vm54_vm0, %v257_v63 }
  0xf7   :  { %v258_v6 = vmax.f32 %v220_v4, 0.0  ;;  %v948_v7 = vpop.f32.mrb[12].mxu0 }
  0xf8   :  { %v235_v8 = vadd.f32 %v948_v7, %v810_v34  ;;  %v229_v9 = vpop.f32.mrb[13].mxu0 }
  0xf9   :  { %v230_v10 = vadd.f32 %v810_v34, %v229_v9  ;;  %1007 = vmatprep.mubr.msk.f32.mxu1 %vm54_vm0, %v258_v6 }
  0xfa   :  { %v261_v11 = vmax.f32 %v235_v8, 0.0  ;;  %1008 = vmatmul.mubr.msk.f32.gmra.mrb[2].mxu1 %vm54_vm0, %v259_v5 }
  0xfb   :  { %v260_v12 = vmax.f32 %v230_v10, 0.0  ;;  %v951_v13 = vpop.f32.mrb[14].mxu0 }
  0xfc   :  { %v245_v14 = vadd.f32 %v951_v13, %v810_v34  ;;  %v239_v15 = vpop.f32.mrb[15].mxu0 }
  0xfd   :  { %v240_v16 = vadd.f32 %v810_v34, %v239_v15  ;;  %1010 = vmatprep.mubr.msk.f32.mxu1 %vm54_vm0, %v260_v12 }
  0xfe   :  { %v263_v17 = vmax.f32 %v245_v14, 0.0  ;;  %1011 = vmatmul.mubr.msk.f32.gmra.mrb[4].mxu1 %vm54_vm0, %v261_v11 }
  0xff   :  { %v262_v18 = vmax.f32 %v240_v16, 0.0  ;;  %v962_v19 = vpop.f32.mrb[16].mxu0 }
 0x100   :  { %v338_v20 = vpop.f32.mrb[17].mxu0 }
 0x101   :  { %1013 = vmatprep.mubr.msk.f32.mxu1 %vm54_vm0, %v262_v18 }
 0x102   :  { %1014 = vmatmul.mubr.msk.f32.gmra.mrb[6].mxu1 %vm54_vm0, %v263_v17 }
 0x103   :  { %v965_v21 = vpop.f32.mrb[18].mxu0 }
 0x104   :  { %v348_v22 = vpop.f32.mrb[19].mxu0 }
 0x107   :  { %v968_v23 = vpop.f32.mrb[20].mxu0 }
 0x108   :  { %v358_v24 = vpop.f32.mrb[21].mxu0 }
 0x10b   :  { %v971_v25 = vpop.f32.mrb[22].mxu0 }
 0x10c   :  { %v368_v26 = vpop.f32.mrb[23].mxu0 }
 0x1b9   :  { %v994_v27 = vpop.f32.mrb[8].mxu1 }
 0x1ba   :  { %v537_v29 = vadd.f32 %v994_v27, %v962_v19  ;;  %v531_v30 = vpop.f32.mrb[9].mxu1 }
 0x1bb   :  { %v532_v31 = vadd.f32 %v531_v30, %v338_v20 }
 0x1bc   :  { %v1333_v32 = vadd.f32 %v1330_v28, %v537_v29 }
 0x1bd   :  { %v1336_v33 = vadd.f32 %v1330_v28, %v532_v31  ;;  %v997_v34 = vpop.f32.mrb[10].mxu1 }
 0x1be   :  { %731 = vst.msk [vmem:[#allocation2 + $0x8] sm:$0xff] %vm649_vm1, %v1333_v32  ;;  %v547_v35 = vadd.f32 %v997_v34, %v965_v21  ;;  %v541_v36 = vpop.f32.mrb[11].mxu1  ;;  %v634_v37 = vmul.f32 %v1333_v32, %v1333_v32 }
 0x1bf   :  { %730 = vst.msk [vmem:[#allocation2] sm:$0xff] %vm649_vm1, %v1336_v33  ;;  %v542_v38 = vadd.f32 %v541_v36, %v348_v22  ;;  %v633_v41 = vmul.f32 %v1336_v33, %v1336_v33 }
 0x1c0   :  { %v1345_v39 = vadd.f32 %v1330_v28, %v547_v35  ;;  %v653_v40 = vsel %vm649_vm1, %v634_v37, 0.0 }
 0x1c1   :  { %v1351_v42 = vadd.f32 %v1330_v28, %v542_v38  ;;  %654 = vadd.xlane.f32.xlu0 %v653_v40  ;;  %v1000_v43 = vpop.f32.mrb[12].mxu1  ;;  %v650_v50 = vsel %vm649_vm1, %v633_v41, 0.0 }
 0x1c2   :  { %733 = vst.msk [vmem:[#allocation2 + $0x18] sm:$0xff] %vm649_vm1, %v1345_v39  ;;  %v557_v44 = vadd.f32 %v1000_v43, %v968_v23  ;;  %v551_v45 = vpop.f32.mrb[13].mxu1  ;;  %v636_v46 = vmul.f32 %v1345_v39, %v1345_v39 }
 0x1c3   :  { %732 = vst.msk [vmem:[#allocation2 + $0x10] sm:$0xff] %vm649_vm1, %v1351_v42  ;;  %v552_v47 = vadd.f32 %v551_v45, %v358_v24  ;;  %v635_v51 = vmul.f32 %v1351_v42, %v1351_v42 }
 0x1c4   :  { %v1360_v48 = vadd.f32 %v1330_v28, %v557_v44  ;;  %v659_v49 = vsel %vm649_vm1, %v636_v46, 0.0 }
 0x1c5   :  { %v1367_v52 = vadd.f32 %v1330_v28, %v552_v47  ;;  %660 = vadd.xlane.f32.xlu1 %v659_v49  ;;  %v1003_v53 = vpop.f32.mrb[14].mxu1  ;;  %651 = vadd.xlane.f32.xlu0 %v650_v50  ;;  %v656_v59 = vsel %vm649_vm1, %v635_v51, 0.0 }
 0x1c6   :  { %735 = vst.msk [vmem:[#allocation2 + $0x28] sm:$0xff] %vm649_vm1, %v1360_v48  ;;  %v567_v54 = vadd.f32 %v1003_v53, %v971_v25  ;;  %v561_v55 = vpop.f32.mrb[15].mxu1  ;;  %v638_v60 = vmul.f32 %v1360_v48, %v1360_v48 }
 0x1c7   :  { %734 = vst.msk [vmem:[#allocation2 + $0x20] sm:$0xff] %vm649_vm1, %v1367_v52  ;;  %v562_v56 = vadd.f32 %v561_v55, %v368_v26  ;;  %v637_v57 = vmul.f32 %v1367_v52, %v1367_v52 }
 0x1c8   :  { %v1376_v58 = vadd.f32 %v1330_v28, %v567_v54  ;;  %v665_v4 = vsel %vm649_vm1, %v638_v60, 0.0 }
 0x1c9   :  { %v1382_v61 = vadd.f32 %v1330_v28, %v562_v56  ;;  %v1006_v62 = vpop.f32.mrb[0].mxu1  ;;  %657 = vadd.xlane.f32.xlu1 %v656_v59  ;;  %v662_v63 = vsel %vm649_vm1, %v637_v57, 0.0 }
 0x1ca   :  { %737 = vst.msk [vmem:[#allocation2 + $0x38] sm:$0xff] %vm649_vm1, %v1376_v58  ;;  %v1388_v0 = vadd.f32 %v1006_v62, %v1330_v28  ;;  %v571_v1 = vpop.f32.mrb[1].mxu1  ;;  %663 = vadd.xlane.f32.xlu0 %v662_v63  ;;  %v640_v5 = vmul.f32 %v1376_v58, %v1376_v58 }
 0x1cb   :  { %736 = vst.msk [vmem:[#allocation2 + $0x30] sm:$0xff] %vm649_vm1, %v1382_v61  ;;  %v1393_v2 = vadd.f32 %v1330_v28, %v571_v1  ;;  %v639_v3 = vmul.f32 %v1382_v61, %v1382_v61 }
 0x1cc   :  { %739 = vst.msk [vmem:[#allocation2 + $0x48] sm:$0xff] %vm649_vm1, %v1388_v0  ;;  %v671_v12 = vsel %vm649_vm1, %v640_v5, 0.0  ;;  %v642_v13 = vmul.f32 %v1388_v0, %v1388_v0 }
 0x1cd   :  { %738 = vst.msk [vmem:[#allocation2 + $0x40] sm:$0xff] %vm649_vm1, %v1393_v2  ;;  %v1009_v6 = vpop.f32.mrb[2].mxu1  ;;  %666 = vadd.xlane.f32.xlu1 %v665_v4  ;;  %v668_v7 = vsel %vm649_vm1, %v639_v3, 0.0  ;;  %v641_v8 = vmul.f32 %v1393_v2, %v1393_v2 }
 0x1ce   :  { %v1408_v9 = vadd.f32 %v1009_v6, %v1330_v28  ;;  %v581_v10 = vpop.f32.mrb[3].mxu1  ;;  %669 = vadd.xlane.f32.xlu0 %v668_v7  ;;  %v677_v20 = vsel %vm649_vm1, %v642_v13, 0.0 }
 0x1cf   :  { %v1411_v11 = vadd.f32 %v1330_v28, %v581_v10  ;;  %v674_v15 = vsel %vm649_vm1, %v641_v8, 0.0 }
 0x1d0   :  { %741 = vst.msk [vmem:[#allocation2 + $0x58] sm:$0xff] %vm649_vm1, %v1408_v9  ;;  %v644_v21 = vmul.f32 %v1408_v9, %v1408_v9 }
 0x1d1   :  { %740 = vst.msk [vmem:[#allocation2 + $0x50] sm:$0xff] %vm649_vm1, %v1411_v11  ;;  %v1012_v14 = vpop.f32.mrb[4].mxu1  ;;  %672 = vadd.xlane.f32.xlu1 %v671_v12  ;;  %v643_v16 = vmul.f32 %v1411_v11, %v1411_v11 }
 0x1d2   :  { %v1424_v17 = vadd.f32 %v1012_v14, %v1330_v28  ;;  %v591_v18 = vpop.f32.mrb[5].mxu1  ;;  %675 = vadd.xlane.f32.xlu0 %v674_v15  ;;  %v683_v29 = vsel %vm649_vm1, %v644_v21, 0.0 }
 0x1d3   :  { %v1427_v19 = vadd.f32 %v1330_v28, %v591_v18  ;;  %v680_v23 = vsel %vm649_vm1, %v643_v16, 0.0 }
 0x1d4   :  { %743 = vst.msk [vmem:[#allocation2 + $0x68] sm:$0xff] %vm649_vm1, %v1424_v17  ;;  %v646_v30 = vmul.f32 %v1424_v17, %v1424_v17 }
 0x1d5   :  { %742 = vst.msk [vmem:[#allocation2 + $0x60] sm:$0xff] %vm649_vm1, %v1427_v19  ;;  %v1015_v22 = vpop.f32.mrb[6].mxu1  ;;  %678 = vadd.xlane.f32.xlu1 %v677_v20  ;;  %v645_v24 = vmul.f32 %v1427_v19, %v1427_v19 }
 0x1d6   :  { %v1440_v25 = vadd.f32 %v1015_v22, %v1330_v28  ;;  %v601_v26 = vpop.f32.mrb[7].mxu1  ;;  %681 = vadd.xlane.f32.xlu0 %v680_v23 }
 0x1d7   :  { %v1443_v27 = vadd.f32 %v1330_v28, %v601_v26  ;;  %v686_v31 = vsel %vm649_vm1, %v645_v24, 0.0  ;;  %v689_v28 = vsel %vm649_vm1, %v646_v30, 0.0 }
 0x1d8   :  { %745 = vst.msk [vmem:[#allocation2 + $0x78] sm:$0xff] %vm649_vm1, %v1440_v25  ;;  %v648_v35 = vmul.f32 %v1440_v25, %v1440_v25 }
 0x1d9   :  { %744 = vst.msk [vmem:[#allocation2 + $0x70] sm:$0xff] %vm649_vm1, %v1443_v27  ;;  %684 = vadd.xlane.f32.xlu1 %v683_v29  ;;  %v647_v34 = vmul.f32 %v1443_v27, %v1443_v27 }
 0x1da   :  { %687 = vadd.xlane.f32.xlu0 %v686_v31  ;;  %v695_v37 = vsel %vm649_vm1, %v648_v35, 0.0 }
 0x1db   :  { %v692_v36 = vsel %vm649_vm1, %v647_v34, 0.0 }
 0x1dd   :  { %690 = vadd.xlane.f32.xlu1 %v689_v28 }
 0x1de   :  { %693 = vadd.xlane.f32.xlu0 %v692_v36 }
 0x1e1   :  { %696 = vadd.xlane.f32.xlu1 %v695_v37 }
 0x24e   :  { %v655_v38 = vpop.xlane.xlu0 %654 }
 0x24f   :  { %v699_v40 = vmax.f32 %v655_v38, 1e-08 }
 0x251   :  { %1064 = vrsqrt.f32 %v699_v40 }
 0x252   :  { %v661_v41 = vpop.xlane.xlu1 %660  ;;  %v652_v43 = vpop.xlane.xlu0 %651 }
 0x253   :  { %v701_v44 = vmax.f32 %v661_v41, 1e-08  ;;  %v698_v45 = vmax.f32 %v652_v43, 1e-08 }
 0x255   :  { %1066 = vrsqrt.f32 %v701_v44 }
 0x256   :  { %1068 = vrsqrt.f32 %v698_v45  ;;  %v658_v46 = vpop.xlane.xlu1 %657 }
 0x257   :  { %v700_v47 = vmax.f32 %v658_v46, 1e-08  ;;  %v664_v49 = vpop.xlane.xlu0 %663 }
 0x258   :  { %v702_v50 = vmax.f32 %v664_v49, 1e-08 }
 0x259   :  { %1070 = vrsqrt.f32 %v700_v47 }
 0x25a   :  { %1072 = vrsqrt.f32 %v702_v50  ;;  %v667_v51 = vpop.xlane.xlu1 %666 }
 0x25b   :  { %v1065_v53 = vpop.eup %1064  ;;  %v703_v54 = vmax.f32 %v667_v51, 1e-08  ;;  %v670_v55 = vpop.xlane.xlu0 %669 }
 0x25c   :  { %v747_v56 = vmul.f32 %v1065_v53, %v1333_v32  ;;  %v704_v57 = vmax.f32 %v670_v55, 1e-08 }
 0x25d   :  { %1074 = vrsqrt.f32 %v703_v54 }
 0x25e   :  { %763 = vst.msk [vmem:[#allocation4 + $0x8] sm:$0xff] %vm649_vm1, %v747_v56  ;;  %1076 = vrsqrt.f32 %v704_v57  ;;  %v673_v59 = vpop.xlane.xlu1 %672 }
 0x25f   :  { %v1067_v60 = vpop.eup %1066  ;;  %v705_v62 = vmax.f32 %v673_v59, 1e-08  ;;  %v676_v63 = vpop.xlane.xlu0 %675 }
 0x260   :  { %v1069_v1 = vpop.eup %1068  ;;  %v749_v3 = vmul.f32 %v1067_v60, %v1345_v39  ;;  %v706_v4 = vmax.f32 %v676_v63, 1e-08 }
 0x261   :  { %v746_v5 = vmul.f32 %v1069_v1, %v1336_v33  ;;  %1078 = vrsqrt.f32 %v705_v62 }
 0x262   :  { %765 = vst.msk [vmem:[#allocation4 + $0x18] sm:$0xff] %vm649_vm1, %v749_v3  ;;  %1080 = vrsqrt.f32 %v706_v4  ;;  %v679_v32 = vpop.xlane.xlu1 %678 }
 0x263   :  { %v1071_v6 = vpop.eup %1070  ;;  %762 = vst.msk [vmem:[#allocation4] sm:$0xff] %vm649_vm1, %v746_v5  ;;  %v707_v7 = vmax.f32 %v679_v32, 1e-08  ;;  %v682_v8 = vpop.xlane.xlu0 %681 }
 0x264   :  { %v1073_v10 = vpop.eup %1072  ;;  %v748_v12 = vmul.f32 %v1071_v6, %v1351_v42  ;;  %v708_v13 = vmax.f32 %v682_v8, 1e-08 }
 0x265   :  { %v750_v14 = vmul.f32 %v1073_v10, %v1367_v52  ;;  %1082 = vrsqrt.f32 %v707_v7 }
 0x266   :  { %764 = vst.msk [vmem:[#allocation4 + $0x10] sm:$0xff] %vm649_vm1, %v748_v12  ;;  %1084 = vrsqrt.f32 %v708_v13  ;;  %v685_v33 = vpop.xlane.xlu1 %684 }
 0x267   :  { %v1075_v39 = vpop.eup %1074  ;;  %766 = vst.msk [vmem:[#allocation4 + $0x20] sm:$0xff] %vm649_vm1, %v750_v14  ;;  %v709_v15 = vmax.f32 %v685_v33, 1e-08  ;;  %v688_v16 = vpop.xlane.xlu0 %687 }
 0x268   :  { %v1077_v18 = vpop.eup %1076  ;;  %v751_v20 = vmul.f32 %v1075_v39, %v1360_v48  ;;  %v710_v21 = vmax.f32 %v688_v16, 1e-08 }
 0x269   :  { %v752_v22 = vmul.f32 %v1077_v18, %v1382_v61  ;;  %1086 = vrsqrt.f32 %v709_v15 }
 0x26a   :  { %767 = vst.msk [vmem:[#allocation4 + $0x28] sm:$0xff] %vm649_vm1, %v751_v20  ;;  %1088 = vrsqrt.f32 %v710_v21  ;;  %v691_v42 = vpop.xlane.xlu1 %690 }
 0x26b   :  { %v1079_v52 = vpop.eup %1078  ;;  %768 = vst.msk [vmem:[#allocation4 + $0x30] sm:$0xff] %vm649_vm1, %v752_v22  ;;  %v711_v23 = vmax.f32 %v691_v42, 1e-08  ;;  %v694_v24 = vpop.xlane.xlu0 %693 }
 0x26c   :  { %v1081_v26 = vpop.eup %1080  ;;  %v753_v29 = vmul.f32 %v1079_v52, %v1376_v58  ;;  %v712_v30 = vmax.f32 %v694_v24, 1e-08 }
 0x26d   :  { %v754_v31 = vmul.f32 %v1081_v26, %v1393_v2  ;;  %1090 = vrsqrt.f32 %v711_v23 }
 0x26e   :  { %769 = vst.msk [vmem:[#allocation4 + $0x38] sm:$0xff] %vm649_vm1, %v753_v29  ;;  %1092 = vrsqrt.f32 %v712_v30  ;;  %v697_v48 = vpop.xlane.xlu1 %696 }
 0x26f   :  { %v1083_v61 = vpop.eup %1082  ;;  %770 = vst.msk [vmem:[#allocation4 + $0x40] sm:$0xff] %vm649_vm1, %v754_v31  ;;  %v713_v34 = vmax.f32 %v697_v48, 1e-08 }
 0x270   :  { %v1085_v28 = vpop.eup %1084  ;;  %v755_v35 = vmul.f32 %v1083_v61, %v1388_v0 }
 0x271   :  { %v756_v36 = vmul.f32 %v1085_v28, %v1411_v11  ;;  %1094 = vrsqrt.f32 %v713_v34 }
 0x272   :  { %771 = vst.msk [vmem:[#allocation4 + $0x48] sm:$0xff] %vm649_vm1, %v755_v35 }
 0x273   :  { %v1087_v58 = vpop.eup %1086  ;;  %772 = vst.msk [vmem:[#allocation4 + $0x50] sm:$0xff] %vm649_vm1, %v756_v36 }
 0x274   :  { %v1089_v2 = vpop.eup %1088  ;;  %v757_v37 = vmul.f32 %v1087_v58, %v1408_v9 }
 0x275   :  { %v758_v38 = vmul.f32 %v1089_v2, %v1427_v19 }
 0x276   :  { %773 = vst.msk [vmem:[#allocation4 + $0x58] sm:$0xff] %vm649_vm1, %v757_v37 }
 0x277   :  { %v1091_v40 = vpop.eup %1090  ;;  %774 = vst.msk [vmem:[#allocation4 + $0x60] sm:$0xff] %vm649_vm1, %v758_v38 }
 0x278   :  { %v1093_v41 = vpop.eup %1092  ;;  %v759_v0 = vmul.f32 %v1091_v40, %v1424_v17 }
 0x279   :  { %v760_v11 = vmul.f32 %v1093_v41, %v1443_v27 }
 0x27a   :  { %775 = vst.msk [vmem:[#allocation4 + $0x68] sm:$0xff] %vm649_vm1, %v759_v0 }
 0x27b   :  { %v1095_v43 = vpop.eup %1094  ;;  %776 = vst.msk [vmem:[#allocation4 + $0x70] sm:$0xff] %vm649_vm1, %v760_v11 }
 0x27c   :  { %v761_v44 = vmul.f32 %v1095_v43, %v1440_v25 }
 0x27e   :  { %777 = vst.msk [vmem:[#allocation4 + $0x78] sm:$0xff] %vm649_vm1, %v761_v44 }
 0x27f   :  { %782 = vsyncadd [#allocation3], 1792  ;;  %s1144_s5 = smov [#allocation2]  }
 0x280   :  { %s783_s8 = sshll.u32 %s1144_s5, 4  ;;  %s784_s8 = int_to_ptr.vmem [resolvable:$true] %s783_s8 }
 0x281   :  { %s1096_s9 = scalar_lea.vmem %s784_s8, 256  ;;  %s1100_s10 = scalar_lea.vmem %s784_s8, 2048 }
 0x282   :  { %p1097_p0 = scmp.ne.s32.totalorder %s784_s8, %s1096_s9  ;;  %p1101_p1 = scmp.lt.s32.totalorder %s784_s8, %s784_s8 }
 0x283   :  { %p1102_p2 = scmp.lt.s32.totalorder %s1100_s10, %s1096_s9 }
 0x285   :  { %p1103_p3 = por %p1102_p2, %p1101_p1 }
 0x287   :  { %p1104_p4 = pnand %p1103_p3, %p1097_p0 }
 0x289   :  { %1107 = shalt.err (!%p1104_p4)
}
 0x28a   :  { %s1108_s13 = scalar_lea.hbm %s1522_s6, 256 }
 0x28b   :  { %p1109_p5 = scmp.ne.s32.totalorder %s1522_s6, %s1108_s13  ;;  %p1112_p6 = scmp.lt.u32.totalorder %s1108_s13, %s1522_s6 }
 0x28d   :  { %p1114_p7 = pnand %p1112_p6, %p1109_p5 }
 0x28f   :  { %1117 = shalt.err (!%p1114_p7)
}
 0x290   :  { %s1145_s3 = smov 128   ;;  %s1146_s17 = smov 8  }
 0x291   :  { %789 = dma.vmem_to_hbm [thread:$0]  %s784_s8, 256, %s1522_s6, [#allocation3], %s1145_s3, %s1145_s3, %s1146_s17  }
 0x292   :  { %794 = vsyncadd [#allocation5], 1792  ;;  %s1147_s20 = smov [#allocation4]  }
 0x293   :  { %s795_s21 = sshll.u32 %s1147_s20, 4  ;;  %s796_s21 = int_to_ptr.vmem [resolvable:$true] %s795_s21 }
 0x294   :  { %s1118_s22 = scalar_lea.vmem %s796_s21, 256  ;;  %s1122_s23 = scalar_lea.vmem %s796_s21, 2048 }
 0x295   :  { %p1119_p8 = scmp.ne.s32.totalorder %s796_s21, %s1118_s22  ;;  %p1123_p9 = scmp.lt.s32.totalorder %s796_s21, %s796_s21 }
 0x296   :  { %p1124_p10 = scmp.lt.s32.totalorder %s1122_s23, %s1118_s22 }
 0x298   :  { %p1125_p11 = por %p1124_p10, %p1123_p9 }
 0x29a   :  { %p1126_p12 = pnand %p1125_p11, %p1119_p8 }
 0x29c   :  { %1129 = shalt.err (!%p1126_p12)
}
 0x29d   :  { %s1130_s26 = scalar_lea.hbm %s1523_s7, 256 }
 0x29e   :  { %p1131_p13 = scmp.ne.s32.totalorder %s1523_s7, %s1130_s26  ;;  %p1134_p0 = scmp.lt.u32.totalorder %s1130_s26, %s1523_s7 }
 0x2a0   :  { %p1136_p1 = pnand %p1134_p0, %p1131_p13 }
 0x2a2   :  { %1139 = shalt.err (!%p1136_p1)
}
 0x2a3   :  { %801 = dma.vmem_to_hbm [thread:$0]  %s796_s21, 256, %s1523_s7, [#allocation5], %s1145_s3, %s1145_s3, %s1146_s17  }
 0x2a4   :  { %1140 = dma.done.wait [#allocation3], 2048  }
 0x2a5   :  { %1141 = vsyncadd [#allocation3], 4294965248 }
 0x2a6   :  { %1142 = dma.done.wait [#allocation5], 2048  }
 0x2a7   :  { %1143 = vsyncadd [#allocation5], 4294965248 }
 0x2a8   :  { %808 = vsyncpa [#allocation3], 1 }
 0x2a9   :  { %809 = vsyncpa [#allocation5], 1 }

</bundles_post_ra>
